<compile_context>
chip_gen: v5e
topology: v5e:2x2
jax: 0.10.0
libtpu: 0.0.40
codegen_flags: <defaults>
</compile_context>

<pallas_src>
import functools
import math

import jax
import jax.numpy as jnp
from jax.experimental import pallas as pl
from jax.experimental.pallas import tpu as pltpu


# ------------------------------------------------------------------ pe table
def make_pe(max_len: int, n_units: int, dtype=jnp.float32):
    """Same construction as the PyTorch module's __init__ (n_units even)."""
    position = jnp.arange(0, max_len, dtype=jnp.float32)[:, None]            # (L, 1)
    div_term = jnp.exp(
        jnp.arange(0, n_units, 2, dtype=jnp.float32) * (-math.log(10000.0) / n_units)
    )                                                                         # (D/2,)
    ang = position * div_term                                                 # (L, D/2)
    pe = jnp.zeros((max_len, n_units), dtype=jnp.float32)
    pe = pe.at[:, 0::2].set(jnp.sin(ang))
    pe = pe.at[:, 1::2].set(jnp.cos(ang))
    return pe.astype(dtype)                                                   # (L, D)


# ------------------------------------------------------------------ kernels
def _pe_add_kernel(x_ref, pe_ref, o_ref):
    # x_ref: (B, tN), pe_ref: (1, tN) -> broadcast add over the batch rows.
    o_ref[...] = x_ref[...] + pe_ref[...]


def _pe_add_dropout_kernel(x_ref, pe_ref, bits_ref, o_ref, *, threshold, scale):
    # Inverted dropout: keep iff bits >= threshold (P(keep) = 1 - p), scale by 1/(1-p).
    y = x_ref[...] + pe_ref[...]
    keep = bits_ref[...] >= jnp.asarray(threshold, dtype=jnp.uint32)
    o_ref[...] = jnp.where(keep, y * jnp.asarray(scale, dtype=y.dtype), jnp.zeros_like(y))


# ------------------------------------------------------------------ tiling
def _choose_tile(n, batch, itemsize, target_block_bytes):
    """Largest tile along the flattened S*D axis that is either the full extent
    or a multiple-of-128 divisor of n, with batch*tile*itemsize <= target."""
    max_elems = max(128, target_block_bytes // max(1, batch * itemsize))
    if n <= max_elems:
        return n
    t = (min(max_elems, n) // 128) * 128
    while t >= 128:
        if n % t == 0:
            return t
        t -= 128
    return n  # fallback: single block (only if n has no suitable divisor)


# ------------------------------------------------------------------ wrapper
def positional_encoding(x, pe, *, p=0.1, training=False, rng_key=None,
                        target_block_bytes=1 << 20):
    """x: (B, S, D) float array. pe: (max_len, D) table. Returns (B, S, D)."""
    B, S, D = x.shape
    N = S * D

    # pe[:S] -> lane-dense (1, S*D) row, pre-cast to x.dtype once (tiny vs x).
    pe_row = jax.lax.slice(pe, (0, 0), (S, D)).astype(x.dtype).reshape(1, N)
    x2 = x.reshape(B, N)

    tn = _choose_tile(N, B, jnp.dtype(x.dtype).itemsize, target_block_bytes)
    grid = (N // tn,)
    cparams = pltpu.CompilerParams(dimension_semantics=("parallel",))

    x_spec = pl.BlockSpec((B, tn), lambda t: (0, t))
    pe_spec = pl.BlockSpec((1, tn), lambda t: (0, t))
    out_spec = pl.BlockSpec((B, tn), lambda t: (0, t))
    out_shape = jax.ShapeDtypeStruct((B, N), x.dtype)

    if (not training) or p == 0.0:
        # Eval mode: nn.Dropout is identity -> just the broadcast add.
        y = pl.pallas_call(
            _pe_add_kernel,
            out_shape=out_shape,
            grid=grid,
            in_specs=[x_spec, pe_spec],
            out_specs=out_spec,
            compiler_params=cparams,
        )(x2, pe_row)
        return y.reshape(B, S, D)

    if rng_key is None:
        rng_key = jax.random.PRNGKey(0)
    # TODO(synk): on real hardware, generate the mask in-kernel with
    # pltpu.prng_seed(seed + pl.program_id(0)) / pltpu.prng_random_bits to drop
    # this extra HBM read stream; done host-side here because prng_seed has no
    # CPU/interpret-mode lowering.
    bits = jax.random.bits(rng_key, (B, N), dtype=jnp.uint32)

    threshold = min(int(round(float(p) * 4294967296.0)), 4294967295)
    scale = 1.0 / (1.0 - float(p))
    kernel = functools.partial(_pe_add_dropout_kernel, threshold=threshold, scale=scale)

    y = pl.pallas_call(
        kernel,
        out_shape=out_shape,
        grid=grid,
        in_specs=[x_spec, pe_spec, pl.BlockSpec((B, tn), lambda t: (0, t))],
        out_specs=out_spec,
        compiler_params=cparams,
    )(x2, pe_row, bits)
    return y.reshape(B, S, D)


# ------------------------------------------------------------------ main
if __name__ == "__main__":
    B, S, D = 2, 8, 32          # batch=2, seq=8, n_units=32
    MAX_LEN = 64                # small max_len (module default is 5000)
    P_DROP = 0.1

    key = jax.random.PRNGKey(0)
    kx, kd = jax.random.split(key)
    x = jax.random.normal(kx, (B, S, D), dtype=jnp.float32)
    pe = make_pe(MAX_LEN, D)

    # Eval-mode forward (dropout identity): deterministic, check vs reference.
    out_eval = positional_encoding(x, pe, p=P_DROP, training=False)
    out_eval = jax.block_until_ready(out_eval)
    ref = x + pe[None, :S, :]
    assert jnp.allclose(out_eval, ref, atol=1e-6), "eval-mode mismatch"

    # Train-mode forward (in-kernel mask apply + scale); stochastic mask by design.
    out_train = positional_encoding(x, pe, p=P_DROP, training=True, rng_key=kd)
    out_train = jax.block_until_ready(out_train)
    assert out_train.shape == (B, S, D)
    # Surviving elements must equal (x + pe) / (1 - p); dropped elements are 0.
    keep_mask = out_train != 0
    expected = ref / (1.0 - P_DROP)
    assert jnp.allclose(jnp.where(keep_mask, out_train, 0.0),
                        jnp.where(keep_mask, expected, 0.0), atol=1e-5), "train-mode mismatch"

    print("KERNEL_OK")
</pallas_src>

<mosaic_0001>
module attributes {stable_mosaic.version = 11 : i64} {
  func.func @_pe_add_kernel(%arg0: i32, %arg1: memref<2x256xf32, #tpu.memory_space<vmem>>, %arg2: memref<1x256xf32, #tpu.memory_space<vmem>>, %arg3: memref<2x256xf32, #tpu.memory_space<vmem>>) attributes {dimension_semantics = [#tpu.dimension_semantics<parallel>], iteration_bounds = array<i64: 1>, scalar_prefetch = 0 : i64, scratch_operands = 0 : i64, tpu.core_type = #tpu.core_type<tc>, window_params = [{transform_indices = @transform_0, window_bounds = array<i64: 2, 256>}, {transform_indices = @transform_1, window_bounds = array<i64: 1, 256>}, {transform_indices = @transform_2, window_bounds = array<i64: 2, 256>}]} {
    %c0 = arith.constant 0 : index
    %c0_0 = arith.constant 0 : index
    %0 = vector.load %arg1[%c0, %c0_0] : memref<2x256xf32, #tpu.memory_space<vmem>>, vector<2x256xf32>
    %c0_1 = arith.constant 0 : index
    %c0_2 = arith.constant 0 : index
    %1 = vector.load %arg2[%c0_1, %c0_2] : memref<1x256xf32, #tpu.memory_space<vmem>>, vector<1x256xf32>
    %2 = vector.broadcast %1 : vector<1x256xf32> to vector<2x256xf32>
    %3 = arith.addf %0, %2 : vector<2x256xf32>
    %c0_3 = arith.constant 0 : index
    %c0_4 = arith.constant 0 : index
    %4 = vector.load %arg3[%c0_3, %c0_4] : memref<2x256xf32, #tpu.memory_space<vmem>>, vector<2x256xf32>
    tpu.vector_store %arg3[%c0_3, %c0_4], %3 {strides = array<i32>} : memref<2x256xf32, #tpu.memory_space<vmem>>, vector<2x256xf32>,
    return
  }
  func.func @transform_0(%arg0: i32) -> (i32, i32) {
    %c0_i32 = arith.constant 0 : i32
    %c0_i32_0 = arith.constant 0 : i32
    return %c0_i32, %arg0 : i32, i32
  }
  func.func @transform_1(%arg0: i32) -> (i32, i32) {
    %c0_i32 = arith.constant 0 : i32
    %c0_i32_0 = arith.constant 0 : i32
    return %c0_i32, %arg0 : i32, i32
  }
  func.func @transform_2(%arg0: i32) -> (i32, i32) {
    %c0_i32 = arith.constant 0 : i32
    %c0_i32_0 = arith.constant 0 : i32
    return %c0_i32, %arg0 : i32, i32
  }
}

</mosaic_0001>

<bundles_post_ra>
// kernel: tpu_custom_call.1
= control target key start
LH: loop header
LB: loop body
LE: loop exit
PB: predicated region body
PF: predicated region fallthrough
CT: control target
= control target key end

     0   :  { %7 = vsyncpa [#allocation3], 0  ;;  %s177_s0 = inlined_call_operand.hbm [shape: f32[2,256], index: 0, kind: input, shape index: {}]   ;;  %s178_s1 = inlined_call_operand.hbm [shape: f32[1,256], index: 1, kind: input, shape index: {}]   ;;  %s179_s2 = inlined_call_operand.hbm [shape: f32[2,256], index: 2, kind: output, shape index: {}]  }
   0x1   :  { %8 = vsyncpa [#allocation6], 0 }
   0x2   :  { %9 = vsyncpa [#allocation4], 0  ;;  %s15_s11 = sshll.u32 %s177_s0, 4  ;;  %s150_s12 = smov [#allocation2]   ;;  %s16_s11 = int_to_ptr.hbm [resolvable:$true] %s15_s11 }
   0x3   :  { %s17_s13 = sshll.u32 %s150_s12, 4  ;;  %s26_s16 = sshll.u32 %s178_s1, 4  ;;  %s18_s13 = int_to_ptr.vmem [resolvable:$true] %s17_s13  ;;  %s27_s16 = int_to_ptr.hbm [resolvable:$true] %s26_s16 }
   0x4   :  { %20 = dma.hbm_to_vmem [thread:$0]  %s16_s11, 64, %s18_s13, [#allocation3]  }
   0x5   :  { %s151_s17 = smov [#allocation5]  }
   0x6   :  { %s28_s18 = sshll.u32 %s151_s17, 4  ;;  %s29_s18 = int_to_ptr.vmem [resolvable:$true] %s28_s18 }
   0x7   :  { %31 = dma.hbm_to_vmem [thread:$0]  %s27_s16, 32, %s29_s18, [#allocation6]  }
   0x8   :  { %144 = dma.done.wait [#allocation3], 64  }
   0x9   :  { %145 = vsyncadd [#allocation3], 4294967232 }
   0xa   :  { %146 = dma.done.wait [#allocation6], 32  }
   0xb   :  { %147 = vsyncadd [#allocation6], 4294967264  ;;  %v41_v0 = vld [vmem:[#allocation5] sm:$0x3]  ;;  %vm46_vm0 = vcmask 1041408   ;;  %s152_s0 = smov [#allocation7]  }
   0xc   :  { %v43_v1 = vperm.slane %v41_v0, 0  ;;  %v44_v2 = vperm.slane %v41_v0, 1  ;;  %v40_v3 = vld [vmem:[#allocation2] sm:$0xf]  ;;  %s56_s19 = sshll.u32 %s152_s0, 4  ;;  %s58_s21 = sshll.u32 %s179_s2, 4  ;;  %s57_s19 = int_to_ptr.vmem [resolvable:$true] %s56_s19  ;;  %s59_s21 = int_to_ptr.hbm [resolvable:$true] %s58_s21 }
   0xe   :  { %v45_v4 = vrot.slane %v44_v2, 6 }
  0x10   :  { %v47_v5 = vsel %vm46_vm0, %v43_v1, %v45_v4 }
  0x11   :  { %v49_v6 = vadd.f32 %v47_v5, %v40_v3 }
  0x13   :  { %50 = vst [vmem:[#allocation7] sm:$0xf] %v49_v6 }
  0x14   :  { %61 = dma.vmem_to_hbm [thread:$0]  %s57_s19, 64, %s59_s21, [#allocation4]  }
  0x15   :  { %148 = dma.done.wait [#allocation4], 64  }
  0x16   :  { %149 = vsyncadd [#allocation4], 4294967232 }
  0x17   :  { %66 = vsyncpa [#allocation3], 1 }
  0x18   :  { %67 = vsyncpa [#allocation6], 1 }
  0x19   :  { %68 = vsyncpa [#allocation4], 1 }

</bundles_post_ra>
